<compile_context>
chip_gen: v7x
topology: tpu7x:2x2x1
jax: 0.10.0
libtpu: 0.0.40
codegen_flags: <defaults>
</compile_context>

<pallas_src>
import jax
import jax.numpy as jnp
from jax.experimental import pallas as pl
from jax.experimental.pallas import tpu as pltpu


# ----------------------------------------------------------------------------
# Tiling helpers
# ----------------------------------------------------------------------------
def _round_up(v, m):
    return ((v + m - 1) // m) * m


def _pick_tile(dim, max_tile, align):
    """Pick a tile size (multiple of `align`, ~<= max_tile) and padded extent."""
    d = _round_up(max(int(dim), 1), align)
    n = -(-d // max_tile)                    # number of tiles
    t = _round_up(-(-d // n), align)         # per-tile size
    return t, n * t


def _vmem_budget_bytes():
    """Generation-aware scoped-VMEM budget (~55% of per-core capacity)."""
    cap = 64 * 1024 * 1024                   # conservative fallback (v7x per-TC)
    try:
        cap = int(pltpu.get_tpu_info().vmem_capacity_bytes)
    except Exception:
        pass
    return int(0.55 * cap)


# ----------------------------------------------------------------------------
# Pallas kernels: fused GEMM + bias + ReLU
# ----------------------------------------------------------------------------
def _gemm_bias_relu_1k_kernel(x_ref, w_ref, b_ref, o_ref):
    """Single-K-block fast path: relu(x @ w + b) straight to the output tile."""
    y = jnp.dot(x_ref[...], w_ref[...], preferred_element_type=jnp.float32)
    o_ref[...] = jnp.maximum(y + b_ref[...], 0.0).astype(o_ref.dtype)


def _gemm_bias_relu_nk_kernel(x_ref, w_ref, b_ref, o_ref, acc_ref):
    """Multi-K path: bias-initialised f32 accumulator, fused final step."""
    k = pl.program_id(2)
    nk = pl.num_programs(2)
    p = jnp.dot(x_ref[...], w_ref[...], preferred_element_type=jnp.float32)

    @pl.when(k == 0)
    def _():
        acc_ref[...] = p + b_ref[...]               # bias folded into the init

    @pl.when(jnp.logical_and(k > 0, k < nk - 1))
    def _():
        acc_ref[...] += p

    @pl.when(k == nk - 1)
    def _():
        o_ref[...] = jnp.maximum(acc_ref[...] + p, 0.0).astype(o_ref.dtype)


def matmul_bias_relu(x, w, b, *, compute_dtype=jnp.bfloat16, out_dtype=None,
                     tm_max=1024, tn_max=256, tk_max=2048):
    """relu(x @ w + b) as a tiled, pipelined Pallas TPU GEMM.

    x: (M, K), w: (K, N), b: (N,).  Operands are zero-padded to aligned tiles,
    cast to `compute_dtype`, accumulated in float32; returns (M, N) in
    `out_dtype` (default: x.dtype).
    """
    M, K = x.shape
    K2, N = w.shape
    assert K == K2 and b.shape == (N,)
    out_dtype = out_dtype if out_dtype is not None else x.dtype

    isz = jnp.dtype(compute_dtype).itemsize
    osz = jnp.dtype(out_dtype).itemsize
    budget = _vmem_budget_bytes()

    # Pick tiles; shrink the M tile if the (double-buffered) estimate would
    # exceed the generation-aware VMEM budget.
    tm_try = tm_max
    while True:
        tm, Mp = _pick_tile(M, tm_try, 16)       # sublane-aligned (covers bf16)
        tn, Np = _pick_tile(N, tn_max, 128)      # lane-dense output stores
        tk, Kp = _pick_tile(K, tk_max, 128)      # lane-aligned contraction
        nk = Kp // tk
        vmem_bytes = (2 * (tm * tk + tk * tn) * isz   # double-buffered x / w
                      + 2 * tn * 4                    # bias tile (f32)
                      + 2 * tm * tn * osz             # double-buffered output
                      + (tm * tn * 4 if nk > 1 else 0))  # f32 acc scratch
        if vmem_bytes <= budget or tm_try <= 64:
            break
        tm_try //= 2
    vmem_limit = int(min(max(vmem_bytes + (2 << 20), 8 << 20), budget))

    # Zero-pad to the tiled extents (no-op copies when already aligned).
    xp = jnp.pad(x.astype(compute_dtype), ((0, Mp - M), (0, Kp - K)))
    wp = jnp.pad(w.astype(compute_dtype), ((0, Kp - K), (0, Np - N)))
    bp = jnp.pad(b.astype(jnp.float32), (0, Np - N)).reshape(1, Np)

    if nk == 1:
        grid_spec = pltpu.PrefetchScalarGridSpec(
            num_scalar_prefetch=0,
            grid=(Mp // tm, Np // tn),
            in_specs=[
                pl.BlockSpec((tm, Kp), lambda i, j: (i, 0)),
                pl.BlockSpec((Kp, tn), lambda i, j: (0, j)),
                pl.BlockSpec((1, tn), lambda i, j: (0, j)),
            ],
            out_specs=pl.BlockSpec((tm, tn), lambda i, j: (i, j)),
        )
        kernel = _gemm_bias_relu_1k_kernel
        dim_sem = ("parallel", "parallel")
    else:
        grid_spec = pltpu.PrefetchScalarGridSpec(
            num_scalar_prefetch=0,
            grid=(Mp // tm, Np // tn, nk),
            in_specs=[
                pl.BlockSpec((tm, tk), lambda i, j, k: (i, k)),
                pl.BlockSpec((tk, tn), lambda i, j, k: (k, j)),
                pl.BlockSpec((1, tn), lambda i, j, k: (0, j)),
            ],
            out_specs=pl.BlockSpec((tm, tn), lambda i, j, k: (i, j)),
            scratch_shapes=[pltpu.VMEM((tm, tn), jnp.float32)],
        )
        kernel = _gemm_bias_relu_nk_kernel
        dim_sem = ("parallel", "parallel", "arbitrary")

    out = pl.pallas_call(
        kernel,
        out_shape=jax.ShapeDtypeStruct((Mp, Np), out_dtype),
        grid_spec=grid_spec,
        compiler_params=pltpu.CompilerParams(
            dimension_semantics=dim_sem,
            vmem_limit_bytes=vmem_limit),
    )(xp, wp, bp)
    # De-pad; XLA fuses this slice into the next layer's patch gather.
    return out[:M, :N]


# ----------------------------------------------------------------------------
# im2col (pure layout glue, stays in XLA) — NHWC, VALID padding, stride s
# ----------------------------------------------------------------------------
def _im2col(x_nhwc, kh, kw, stride):
    N, H, W, C = x_nhwc.shape
    Ho = (H - kh) // stride + 1
    Wo = (W - kw) // stride + 1
    parts = []
    for i in range(kh):
        for j in range(kw):
            parts.append(x_nhwc[:, i:i + stride * Ho:stride,
                                j:j + stride * Wo:stride, :][:, :, :, None, :])
    patches = jnp.concatenate(parts, axis=3)          # (N, Ho, Wo, kh*kw, C)
    return patches.reshape(N * Ho * Wo, kh * kw * C), Ho, Wo


# ----------------------------------------------------------------------------
# Module port with deterministic in-script parameter init
# ----------------------------------------------------------------------------
class CNNFeatureExtractorPallas:
    def __init__(self, input_channels=12, output_features=512,
                 height=96, width=96, compute_dtype=jnp.bfloat16,
                 key=jax.random.PRNGKey(0)):
        self.compute_dtype = compute_dtype
        k = jax.random.split(key, 8)

        def conv_init(kw_key, kb_key, kh, kw, cin, cout):
            bound = 1.0 / jnp.sqrt(cin * kh * kw)
            w = jax.random.uniform(kw_key, (kh, kw, cin, cout), jnp.float32,
                                   -bound, bound)
            b = jax.random.uniform(kb_key, (cout,), jnp.float32, -bound, bound)
            return w, b

        self.w1, self.b1 = conv_init(k[0], k[1], 8, 8, input_channels, 32)
        self.w2, self.b2 = conv_init(k[2], k[3], 4, 4, 32, 64)
        self.w3, self.b3 = conv_init(k[4], k[5], 3, 3, 64, 64)

        # analytic equivalent of torch _get_conv_out_size (padding=0, VALID)
        def out_hw(h, w, ksz, s):
            return (h - ksz) // s + 1, (w - ksz) // s + 1
        h1_, w1_ = out_hw(height, width, 8, 4)
        h2_, w2_ = out_hw(h1_, w1_, 4, 2)
        h3_, w3_ = out_hw(h2_, w2_, 3, 1)
        self.conv_out_size = 64 * h3_ * w3_

        bound = 1.0 / jnp.sqrt(self.conv_out_size)
        # fc weight kept in torch layout (rows indexed by NCHW flatten order).
        self.wfc_torch = jax.random.uniform(
            k[6], (self.conv_out_size, output_features), jnp.float32,
            -bound, bound)
        self.bfc = jax.random.uniform(k[7], (output_features,), jnp.float32,
                                      -bound, bound)
        # Absorb the NHWC->NCHW transpose into the fc weight once (init time):
        # NHWC-flatten position (h, w, c) must pick torch row c*H*W + h*W + w.
        perm = jnp.transpose(
            jnp.arange(self.conv_out_size).reshape(64, h3_, w3_),
            (1, 2, 0)).reshape(-1)
        self.wfc_nhwc = self.wfc_torch[perm]

    def _conv_relu(self, x_nhwc, w_hwio, b, stride):
        N = x_nhwc.shape[0]
        KH, KW, C, Cout = w_hwio.shape
        patches, Ho, Wo = _im2col(x_nhwc, KH, KW, stride)
        w2d = w_hwio.reshape(KH * KW * C, Cout)
        # Large M tiles (M = B*Ho*Wo), single K block (K <= 2048) -> fast-path kernel.
        y = matmul_bias_relu(patches, w2d, b,
                             compute_dtype=self.compute_dtype,
                             out_dtype=self.compute_dtype,
                             tm_max=1024, tn_max=128, tk_max=2048)
        return y.reshape(N, Ho, Wo, Cout)

    def __call__(self, x_nchw):
        x = jnp.transpose(x_nchw, (0, 2, 3, 1))      # NCHW -> NHWC (layout glue)
        x = self._conv_relu(x, self.w1, self.b1, 4)
        x = self._conv_relu(x, self.w2, self.b2, 2)
        x = self._conv_relu(x, self.w3, self.b3, 1)
        x = x.reshape(x.shape[0], -1)                # NHWC flatten (wfc pre-permuted)
        # fc: collapse K grid to 1 block; tn=256 keeps >=2 parallel N blocks.
        return matmul_bias_relu(x, self.wfc_nhwc, self.bfc,
                                compute_dtype=self.compute_dtype,
                                out_dtype=jnp.float32,
                                tm_max=512, tn_max=256, tk_max=4096)


# ----------------------------------------------------------------------------
# Pure-JAX reference (torch semantics; for correctness check only)
# ----------------------------------------------------------------------------
def _ref_forward(x_nchw, m, dtype):
    def cast(a):
        return a.astype(dtype)

    def conv(x, w_hwio, b, s):
        y = jax.lax.conv_general_dilated(
            cast(x), cast(w_hwio), (s, s), "VALID",
            dimension_numbers=("NCHW", "HWIO", "NCHW"),
            preferred_element_type=jnp.float32)
        return cast(jnp.maximum(y + b[None, :, None, None], 0.0))

    x = conv(x_nchw, m.w1, m.b1, 4)
    x = conv(x, m.w2, m.b2, 2)
    x = conv(x, m.w3, m.b3, 1)
    flat = x.reshape(x.shape[0], -1)                 # NCHW flatten (torch .view)
    y = jnp.dot(cast(flat), cast(m.wfc_torch),
                preferred_element_type=jnp.float32)
    return jnp.maximum(y + m.bfc, 0.0)


if __name__ == "__main__":
    key = jax.random.PRNGKey(0)
    k_param, k_x, k_a, k_w, k_b = jax.random.split(key, 5)

    # --- direct unit check of the multi-K accumulator path (forced via tk_max) ---
    a = jax.random.normal(k_a, (64, 512), jnp.float32)
    wt = jax.random.normal(k_w, (512, 96), jnp.float32)
    bb = jax.random.normal(k_b, (96,), jnp.float32)
    got = jax.block_until_ready(
        matmul_bias_relu(a, wt, bb, compute_dtype=jnp.float32,
                         out_dtype=jnp.float32, tk_max=128))
    want = jnp.maximum(a @ wt + bb, 0.0)
    assert jnp.allclose(got, want, rtol=1e-3, atol=1e-3), \
        float(jnp.max(jnp.abs(got - want)))

    # Small shapes consistent with the module (8/4/3 kernel chain needs H,W >= 40).
    B, C, H, W = 2, 4, 48, 48
    OUT_FEATURES = 32
    x = jax.random.normal(k_x, (B, C, H, W), jnp.float32)

    # --- float32 compute path: tight check against the lax.conv reference ---
    m32 = CNNFeatureExtractorPallas(input_channels=C, output_features=OUT_FEATURES,
                                    height=H, width=W,
                                    compute_dtype=jnp.float32, key=k_param)
    out32 = jax.block_until_ready(jax.jit(m32.__call__)(x))
    assert out32.shape == (B, OUT_FEATURES)
    ref32 = _ref_forward(x, m32, jnp.float32)
    assert jnp.allclose(out32, ref32, rtol=1e-3, atol=1e-3), \
        float(jnp.max(jnp.abs(out32 - ref32)))

    # --- bfloat16 compute path (perf config): check against bf16-matched ref ---
    m16 = CNNFeatureExtractorPallas(input_channels=C, output_features=OUT_FEATURES,
                                    height=H, width=W,
                                    compute_dtype=jnp.bfloat16, key=k_param)
    out16 = jax.block_until_ready(jax.jit(m16.__call__)(x))
    assert out16.shape == (B, OUT_FEATURES)
    ref16 = _ref_forward(x, m16, jnp.bfloat16)
    assert jnp.allclose(out16, ref16, rtol=5e-2, atol=5e-2), \
        float(jnp.max(jnp.abs(out16 - ref16)))

    print("KERNEL_OK")
</pallas_src>

<mosaic_0001>
module attributes {stable_mosaic.version = 11 : i64} {
  func.func @_gemm_bias_relu_nk_kernel(%arg0: i32, %arg1: i32, %arg2: i32, %arg3: memref<64x128xf32, #tpu.memory_space<vmem>>, %arg4: memref<128x128xf32, #tpu.memory_space<vmem>>, %arg5: memref<1x128xf32, #tpu.memory_space<vmem>>, %arg6: memref<64x128xf32, #tpu.memory_space<vmem>>, %arg7: memref<64x128xf32, #tpu.memory_space<vmem>>) attributes {dimension_semantics = [#tpu.dimension_semantics<parallel>, #tpu.dimension_semantics<parallel>, #tpu.dimension_semantics<arbitrary>], iteration_bounds = array<i64: 1, 1, 4>, scalar_prefetch = 0 : i64, scratch_operands = 1 : i64, tpu.core_type = #tpu.core_type<tc>, window_params = [{transform_indices = @transform_0, window_bounds = array<i64: 64, 128>}, {transform_indices = @transform_1, window_bounds = array<i64: 128, 128>}, {transform_indices = @transform_2, window_bounds = array<i64: 1, 128>}, {transform_indices = @transform_3, window_bounds = array<i64: 64, 128>}]} {
    %c0 = arith.constant 0 : index
    %c0_0 = arith.constant 0 : index
    %0 = vector.load %arg3[%c0, %c0_0] : memref<64x128xf32, #tpu.memory_space<vmem>>, vector<64x128xf32>
    %c0_1 = arith.constant 0 : index
    %c0_2 = arith.constant 0 : index
    %1 = vector.load %arg4[%c0_1, %c0_2] : memref<128x128xf32, #tpu.memory_space<vmem>>, vector<128x128xf32>
    %cst = arith.constant dense<0.000000e+00> : vector<64x128xf32>
    %2 = tpu.matmul %0, %1, %cst {dimension_numbers = #tpu.dot_dimension_numbers<[1], [0], [0], [1], [0, 0, 1, 1], [], []>} : vector<64x128xf32>, vector<128x128xf32>, vector<64x128xf32> -> vector<64x128xf32>
    %c0_i32 = arith.constant 0 : i32
    %3 = arith.cmpi eq, %arg2, %c0_i32 : i32
    %4 = arith.extui %3 : i1 to i32
    %c0_i32_3 = arith.constant 0 : i32
    %5 = arith.cmpi ne, %4, %c0_i32_3 : i32
    scf.if %5 {
      %c0_8 = arith.constant 0 : index
      %c0_9 = arith.constant 0 : index
      %14 = vector.load %arg5[%c0_8, %c0_9] : memref<1x128xf32, #tpu.memory_space<vmem>>, vector<1x128xf32>
      %15 = vector.broadcast %14 : vector<1x128xf32> to vector<64x128xf32>
      %16 = arith.addf %2, %15 : vector<64x128xf32>
      %c0_10 = arith.constant 0 : index
      %c0_11 = arith.constant 0 : index
      %17 = vector.load %arg7[%c0_10, %c0_11] : memref<64x128xf32, #tpu.memory_space<vmem>>, vector<64x128xf32>
      tpu.vector_store %arg7[%c0_10, %c0_11], %16 {strides = array<i32>} : memref<64x128xf32, #tpu.memory_space<vmem>>, vector<64x128xf32>,
    } else {
    }
    %c0_i32_4 = arith.constant 0 : i32
    %6 = arith.cmpi sgt, %arg2, %c0_i32_4 : i32
    %c3_i32 = arith.constant 3 : i32
    %7 = arith.cmpi slt, %arg2, %c3_i32 : i32
    %8 = arith.andi %6, %7 : i1
    %9 = arith.extui %8 : i1 to i32
    %c0_i32_5 = arith.constant 0 : i32
    %10 = arith.cmpi ne, %9, %c0_i32_5 : i32
    scf.if %10 {
      %c0_8 = arith.constant 0 : index
      %c0_9 = arith.constant 0 : index
      %14 = vector.load %arg7[%c0_8, %c0_9] : memref<64x128xf32, #tpu.memory_space<vmem>>, vector<64x128xf32>
      %15 = arith.addf %14, %2 : vector<64x128xf32>
      %c0_10 = arith.constant 0 : index
      %c0_11 = arith.constant 0 : index
      %16 = vector.load %arg7[%c0_10, %c0_11] : memref<64x128xf32, #tpu.memory_space<vmem>>, vector<64x128xf32>
      tpu.vector_store %arg7[%c0_10, %c0_11], %15 {strides = array<i32>} : memref<64x128xf32, #tpu.memory_space<vmem>>, vector<64x128xf32>,
    } else {
    }
    %c3_i32_6 = arith.constant 3 : i32
    %11 = arith.cmpi eq, %arg2, %c3_i32_6 : i32
    %12 = arith.extui %11 : i1 to i32
    %c0_i32_7 = arith.constant 0 : i32
    %13 = arith.cmpi ne, %12, %c0_i32_7 : i32
    scf.if %13 {
      %c0_8 = arith.constant 0 : index
      %c0_9 = arith.constant 0 : index
      %14 = vector.load %arg7[%c0_8, %c0_9] : memref<64x128xf32, #tpu.memory_space<vmem>>, vector<64x128xf32>
      %15 = arith.addf %14, %2 : vector<64x128xf32>
      %cst_10 = arith.constant 0.000000e+00 : f32
      %16 = vector.broadcast %cst_10 : f32 to vector<64x128xf32>
      %17 = arith.maximumf %15, %16 : vector<64x128xf32>
      %c0_11 = arith.constant 0 : index
      %c0_12 = arith.constant 0 : index
      %18 = vector.load %arg6[%c0_11, %c0_12] : memref<64x128xf32, #tpu.memory_space<vmem>>, vector<64x128xf32>
      tpu.vector_store %arg6[%c0_11, %c0_12], %17 {strides = array<i32>} : memref<64x128xf32, #tpu.memory_space<vmem>>, vector<64x128xf32>,
    } else {
    }
    return
  }
  func.func @transform_0(%arg0: i32, %arg1: i32, %arg2: i32) -> (i32, i32) {
    %c0_i32 = arith.constant 0 : i32
    return %arg0, %arg2 : i32, i32
  }
  func.func @transform_1(%arg0: i32, %arg1: i32, %arg2: i32) -> (i32, i32) {
    %c0_i32 = arith.constant 0 : i32
    return %arg2, %arg1 : i32, i32
  }
  func.func @transform_2(%arg0: i32, %arg1: i32, %arg2: i32) -> (i32, i32) {
    %c0_i32 = arith.constant 0 : i32
    %c0_i32_0 = arith.constant 0 : i32
    return %c0_i32, %arg1 : i32, i32
  }
  func.func @transform_3(%arg0: i32, %arg1: i32, %arg2: i32) -> (i32, i32) {
    %c0_i32 = arith.constant 0 : i32
    return %arg0, %arg1 : i32, i32
  }
}

</mosaic_0001>

<bundles_post_ra>
// kernel: tpu_custom_call.1
= control target key start
LH: loop header
LB: loop body
LE: loop exit
PB: predicated region body
PF: predicated region fallthrough
CT: control target
= control target key end

     0   :  { %8 = vsyncpa [#allocation4], 0  ;;  %s1258_s0 = inlined_call_operand.hbm [shape: f32[64,512], index: 0, kind: input, shape index: {}]   ;;  %s1259_s1 = inlined_call_operand.hbm [shape: f32[512,128], index: 1, kind: input, shape index: {}]   ;;  %s1260_s2 = inlined_call_operand.vmem [shape: f32[1,128], index: 2, kind: input, shape index: {}]   ;;  %s1261_s3 = inlined_call_operand.hbm [shape: f32[64,128], index: 3, kind: output, shape index: {}]  }
   0x1   :  { %10 = vsyncpa [#allocation4 + $0x1], 0 }
   0x2   :  { %11 = vsyncpa [#allocation7], 0 }
   0x3   :  { %13 = vsyncpa [#allocation7 + $0x1], 0 }
   0x4   :  { %14 = vsyncpa [#allocation5], 0  ;;  %s989_s12 = smov 0   ;;  %s991_s13 = smov 0  }
   0x5   :  { %s993_s14 = smov 0   ;;  %s995_s15 = smov 0  }
   0x6   :  { %s997_s16 = smov 0   ;;  %s999_s17 = smov 0  }
   0x7 LB: > { %s607_s18 = sadd.s32 4294967295, %s959_s17   ;;  %s32_s19 = sadd.s32 1, %s955_s16  ;;  %s959_s17 = sphi %s999_s17, %s20_s17   ;;  %s955_s16 = sphi %s997_s16, %s1274_s16   ;;  %s951_s15 = sphi %s995_s15, %s1273_s15   ;;  %s947_s14 = sphi %s993_s14, %s1272_s14   ;;  %s943_s13 = sphi %s991_s13, %s1271_s13   ;;  %s939_s12 = sphi %s989_s12, %s1270_s12  }
   0x8   : > { %p33_p0 = scmp.ge.s32.totalorder %s32_s19, 4  ;;  %s48_s20 = sadd.s32 1, %s947_s14 }
   0x9   : > { %p55_p1 = scmp.ne.s32.totalorder %s947_s14, %s943_s13  ;;  %p56_p2 = scmp.eq.s32.totalorder %s959_s17, 0 }
   0xa   : > { %s1276_s19 = smov (%p33_p0, %s32_s19), 0  ;;  %p61_p4 = scmp.ne.s32.totalorder %s943_s13, %s939_s12 }
   0xb   : > { %p1025_p3 = por %p56_p2, %p55_p1  ;;  %s44_s22 = ssub.s32 %s955_s16, %s1276_s19 }
   0xc   : > { %p62_p5 = scmp.eq.s32.totalorder %s607_s18, 0  ;;  %p46_p6 = scmp.eq.s32.totalorder %s44_s22, 0 }
   0xd   : > { %p758_p8 = scmp.lt.s32.totalorder %s959_s17, 4  ;;  %s1043_s25 = sand.u32 1, %s947_s14  }
   0xe   : > { %p1034_p7 = por %p62_p5, %p61_p4  ;;  %s612_s26 = sshll.u32 %s955_s16, 7 }
   0xf   : > { %s1040_s24 = scalar_select %p46_p6, %s947_s14, %s48_s20  }
  0x10   : > { %s1264_s23 = scalar_select %p1034_p7, 1, 0 }
  0x11   : > { %s611_s27 = sshll.u32 %s1043_s25, 6  ;;  %s1050_s30 = scalar_lea.hbm %s1258_s0, %s612_s26 }
  0x12   : > { %s177_s4 = scalar_lea.vmem [#allocation3], %s611_s27  ;;  %p1054_p9 = pnand %p758_p8, %p1025_p3 }
  0x13   : > { %s186_s5 = sshll.u32 %s177_s4, 4  ;;  %s174_s7 = scalar_lea.sflag [#allocation4], %s1043_s25  ;;  %s1058_s5 = int_to_ptr.vmem [resolvable:$true] %s186_s5 }
  0x14   : > { %s815_s8 = scalar_lea.hbm %s1050_s30, 1024  ;;  %p817_p12 = pneg %p1054_p9 }
  0x15   : > { %p816_p11 = scmp.ne.s32.totalorder %s1050_s30, %s815_s8  ;;  %s820_s11 = scalar_lea.hbm %s1258_s0, 4096 }
  0x16   : > { %p821_p1 = scmp.lt.u32.totalorder %s1050_s30, %s1258_s0  ;;  %p822_p2 = scmp.lt.u32.totalorder %s820_s11, %s815_s8 }
  0x17   : > { %p818_p13 = pnand %p817_p12, %p816_p11  ;;  %p824_p4 = scmp.lt.u32.totalorder %s815_s8, %s1050_s30 }
  0x18   : > { %p823_p3 = por %p822_p2, %p821_p1 }
  0x19   : > { %p819_p0 = pneg %p818_p13 }
  0x1a   : > { %p825_p5 = por %p824_p4, %p823_p3 }
  0x1c   : > { %p826_p6 = pnand %p825_p5, %p819_p0 }
  0x1e   : > { %829 = shalt.err (!%p826_p6)
}
  0x1f   : > { %s830_s21 = scalar_lea.vmem %s1058_s5, 1024  ;;  %s961_s22 = smov [#allocation3]  }
  0x20   : > { %p831_p8 = scmp.ne.s32.totalorder %s1058_s5, %s830_s21  ;;  %s835_s26 = sshll.u32 %s961_s22, 4  ;;  %s836_s26 = int_to_ptr.vmem [resolvable:$false] %s835_s26 }
  0x21   : > { %s837_s27 = scalar_lea.vmem %s836_s26, 2048  ;;  %p838_p10 = scmp.lt.s32.totalorder %s1058_s5, %s836_s26 }
  0x22   : > { %p833_p11 = pnand %p831_p8, %p817_p12  ;;  %p839_p1 = scmp.lt.s32.totalorder %s837_s27, %s830_s21 }
  0x24   : > { %p834_p13 = pneg %p833_p11  ;;  %p840_p2 = por %p839_p1, %p838_p10 }
  0x26   : > { %p841_p3 = pnand %p840_p2, %p834_p13 }
  0x28   : > { %844 = shalt.err (!%p841_p3)
}
  0x29   : > { %s962_s28 = smov 512   ;;  %s963_s29 = smov 128  }
  0x2a   : > { %s964_s4 = smov 8   ;;  %p216_p10 = scmp.lt.s32.totalorder %s959_s17, 5 }
  0x2b   : > { %754 = dma.hbm_to_vmem [thread:$0]  (!%p1054_p9), %s1050_s30, 1024, %s1058_s5, %s174_s7, %s962_s28, %s963_s29, %s964_s4  }
  0x2c   : > { %s613_s8 = sshll.u32 %s1043_s25, 7  ;;  %s626_s9 = sshll.u32 %s955_s16, 11 }
  0x2d   : > { %p1266_p0 = scmp.ge.s32.totalorder %s959_s17, 1  ;;  %s1103_s20 = scalar_lea.hbm %s1259_s1, %s626_s9 }
  0x2e   : > { %s200_s21 = scalar_lea.vmem [#allocation6], %s613_s8  ;;  %s197_s30 = scalar_lea.sflag [#allocation7], %s1043_s25 }
  0x2f   : > { %p1096_p4 = pnand %p1266_p0, %p216_p10  ;;  %s208_s22 = sshll.u32 %s200_s21, 4  ;;  %s1105_s22 = int_to_ptr.vmem [resolvable:$true] %s208_s22 }
  0x30   : > { %s845_s5 = scalar_lea.hbm %s1103_s20, 2048  ;;  %s850_s27 = scalar_lea.hbm %s1259_s1, 8192 }
  0x31   : > { %p846_p5 = scmp.ne.s32.totalorder %s1103_s20, %s845_s5  ;;  %p851_p11 = scmp.lt.u32.totalorder %s1103_s20, %s1259_s1 }
  0x32   : > { %p852_p13 = scmp.lt.u32.totalorder %s850_s27, %s845_s5  ;;  %p854_p2 = scmp.lt.u32.totalorder %s845_s5, %s1103_s20 }
  0x33   : > { %p848_p6 = pnand %p846_p5, %p817_p12 }
  0x34   : > { %p853_p1 = por %p852_p13, %p851_p11 }
  0x35   : > { %p849_p8 = pneg %p848_p6 }
  0x36   : > { %p855_p3 = por %p854_p2, %p853_p1 }
  0x38   : > { %p856_p10 = pnand %p855_p3, %p849_p8 }
  0x3a   : > { %859 = shalt.err (!%p856_p10)
}
  0x3b   : > { %s860_s8 = scalar_lea.vmem %s1105_s22, 2048  ;;  %s965_s11 = smov [#allocation6]  }
  0x3c   : > { %p861_p0 = scmp.ne.s32.totalorder %s1105_s22, %s860_s8  ;;  %s865_s12 = sshll.u32 %s965_s11, 4  ;;  %s866_s12 = int_to_ptr.vmem [resolvable:$false] %s865_s12 }
  0x3d   : > { %s867_s21 = scalar_lea.vmem %s866_s12, 4096  ;;  %p868_p7 = scmp.lt.s32.totalorder %s1105_s22, %s866_s12 }
  0x3e   : > { %p863_p5 = pnand %p861_p0, %p817_p12  ;;  %p869_p11 = scmp.lt.s32.totalorder %s867_s21, %s860_s8 }
  0x40   : > { %p864_p6 = pneg %p863_p5  ;;  %p870_p13 = por %p869_p11, %p868_p7 }
  0x42   : > { %p871_p1 = pnand %p870_p13, %p864_p6 }
  0x44   : > { %874 = shalt.err (!%p871_p1)
}
  0x45   : > { %757 = dma.hbm_to_vmem [thread:$0]  (!%p1054_p9), %s1103_s20, 2048, %s1105_s22, %s197_s30, %s963_s29, %s963_s29, %s964_s4  }
  0x46   : > { %220 = sbr.rel (%p1096_p4) target bundleno = 387 (0x183), region = 32  ;;  %s222_s5 = sand.u32 (!%p1096_p4), 1, %s943_s13  }
  0x47   : > { %s617_s7 = sshll.u32 (!%p1096_p4), %s222_s5, 6  ;;  %s223_s26 = scalar_lea.sflag (!%p1096_p4), [#allocation4], %s222_s5 }
  0x48   : > { %s1139_s27 = scalar_lea.vmem (!%p1096_p4), [#allocation3], %s617_s7  ;;  %p1268_p7 = scmp.ne.s32.totalorder (!%p1096_p4), %s1264_s23, 0 }
  0x4d   : > { %926 = dma.done.wait (%p1268_p7), %s223_s26, 1024  }
  0x4e   : > { %928 = vsyncadd (%p1268_p7), %s223_s26, 4294966272  ;;  %s618_s25 = sshll.u32 %s222_s5, 7  ;;  %s232_s6 = scalar_lea.sflag [#allocation7], %s222_s5 }
  0x4f   : > { %s1145_s28 = scalar_lea.vmem [#allocation6], %s618_s25 }
  0x50   : > { %930 = dma.done.wait (%p1268_p7), %s232_s6, 2048  }
  0x51   : > { %932 = vsyncadd (%p1268_p7), %s232_s6, 4294965248  ;;  %v275_v0 = vld [vmem:[%s1145_s28] sm:$0xff]  ;;  %v276_v1 = vld [vmem:[%s1145_s28 + $0x8] sm:$0xff]  ;;  %p619_p9 = scmp.ne.s32.totalorder %s951_s15, 0 }
  0x52   : > { %v277_v2 = vld [vmem:[%s1145_s28 + $0x10] sm:$0xff]  ;;  %v695_v3 = vpack.c.bf16 %v276_v1, %v275_v0  ;;  %v278_v4 = vld [vmem:[%s1145_s28 + $0x18] sm:$0xff]  ;;  %v279_v6 = vld [vmem:[%s1145_s28 + $0x20] sm:$0xff] }
  0x53   : > { %v699_v5 = vpack.c.bf16 %v278_v4, %v277_v2  ;;  %v280_v7 = vld [vmem:[%s1145_s28 + $0x28] sm:$0xff]  ;;  %v267_v9 = vld [vmem:[%s1139_s27] sm:$0xff]  ;;  %v281_v11 = vld [vmem:[%s1145_s28 + $0x30] sm:$0xff] }
  0x54   : > { %696 = vmatprep.subr.bf16.mxu0 %v695_v3  ;;  %727 = vmatprep.subr.bf16.mxu1 %v695_v3  ;;  %v703_v8 = vpack.c.bf16 %v280_v7, %v279_v6  ;;  %v271_v10 = vld [vmem:[%s1139_s27 + $0x20] sm:$0xff]  ;;  %v282_v12 = vld [vmem:[%s1145_s28 + $0x38] sm:$0xff]  ;;  %v284_v15 = vld [vmem:[%s1145_s28 + $0x48] sm:$0xff] }
  0x55   : > { %698 = vmatpush3.bf16.msra.mxu0 %v695_v3  ;;  %735 = vmatpush3.bf16.msra.mxu1 %v695_v3  ;;  %v707_v13 = vpack.c.bf16 %v282_v12, %v281_v11  ;;  %v283_v14 = vld [vmem:[%s1145_s28 + $0x40] sm:$0xff]  ;;  %v285_v17 = vld [vmem:[%s1145_s28 + $0x50] sm:$0xff]  ;;  %v286_v18 = vld [vmem:[%s1145_s28 + $0x58] sm:$0xff] }
  0x56   : > { %700 = vmatprep.subr.bf16.mxu0 %v699_v5  ;;  %728 = vmatprep.subr.bf16.mxu1 %v699_v5  ;;  %v711_v16 = vpack.c.bf16 %v284_v15, %v283_v14  ;;  %v715_v19 = vpack.c.bf16 %v286_v18, %v285_v17  ;;  %v287_v20 = vld [vmem:[%s1145_s28 + $0x60] sm:$0xff]  ;;  %v288_v21 = vld [vmem:[%s1145_s28 + $0x68] sm:$0xff]  ;;  %v289_v23 = vld [vmem:[%s1145_s28 + $0x70] sm:$0xff] }
  0x57   : > { %683 = vmatprep.mubr.f32.mxu0 %v267_v9  ;;  %689 = vmatprep.mubr.f32.mxu1 %v271_v10  ;;  %v719_v22 = vpack.c.bf16 %v288_v21, %v287_v20  ;;  %v290_v24 = vld [vmem:[%s1145_s28 + $0x78] sm:$0xff]  ;;  %v268_v26 = vld [vmem:[%s1139_s27 + $0x8] sm:$0xff]  ;;  %v269_v28 = vld [vmem:[%s1139_s27 + $0x10] sm:$0xff] }
  0x58   : > { %v723_v25 = vpack.c.bf16 %v290_v24, %v289_v23  ;;  %v272_v27 = vld [vmem:[%s1139_s27 + $0x28] sm:$0xff]  ;;  %v273_v29 = vld [vmem:[%s1139_s27 + $0x30] sm:$0xff]  ;;  %v270_v30 = vld [vmem:[%s1139_s27 + $0x18] sm:$0xff] }
  0x59   : > { %702 = vmatpush3.bf16.msra.mxu0 %v699_v5  ;;  %736 = vmatpush3.bf16.msra.mxu1 %v699_v5  ;;  %v274_v31 = vld [vmem:[%s1139_s27 + $0x38] sm:$0xff]  ;;  %v620_v40 = vld [vmem:[%s1260_s2] ss:$0 sm:$0xff] (!%p619_p9) }
  0x5a   : > { %704 = vmatprep.subr.bf16.mxu0 %v703_v8  ;;  %729 = vmatprep.subr.bf16.mxu1 %v703_v8 }
  0x5d   : > { %706 = vmatpush3.bf16.msra.mxu0 %v703_v8  ;;  %737 = vmatpush3.bf16.msra.mxu1 %v703_v8 }
  0x5e   : > { %708 = vmatprep.subr.bf16.mxu0 %v707_v13  ;;  %730 = vmatprep.subr.bf16.mxu1 %v707_v13 }
  0x61   : > { %710 = vmatpush3.bf16.msra.mxu0 %v707_v13  ;;  %738 = vmatpush3.bf16.msra.mxu1 %v707_v13 }
  0x62   : > { %712 = vmatprep.subr.bf16.mxu0 %v711_v16  ;;  %731 = vmatprep.subr.bf16.mxu1 %v711_v16 }
  0x65   : > { %714 = vmatpush3.bf16.msra.mxu0 %v711_v16  ;;  %739 = vmatpush3.bf16.msra.mxu1 %v711_v16 }
  0x66   : > { %716 = vmatprep.subr.bf16.mxu0 %v715_v19  ;;  %732 = vmatprep.subr.bf16.mxu1 %v715_v19 }
  0x69   : > { %718 = vmatpush3.bf16.msra.mxu0 %v715_v19  ;;  %740 = vmatpush3.bf16.msra.mxu1 %v715_v19 }
  0x6a   : > { %720 = vmatprep.subr.bf16.mxu0 %v719_v22  ;;  %733 = vmatprep.subr.bf16.mxu1 %v719_v22 }
  0x6d   : > { %722 = vmatpush3.bf16.msra.mxu0 %v719_v22  ;;  %741 = vmatpush3.bf16.msra.mxu1 %v719_v22 }
  0x6e   : > { %724 = vmatprep.subr.bf16.mxu0 %v723_v25  ;;  %734 = vmatprep.subr.bf16.mxu1 %v723_v25 }
  0x71   : > { %726 = vmatpush3.bf16.msra.mxu0 %v723_v25  ;;  %742 = vmatpush3.bf16.msra.mxu1 %v723_v25 }
  0x74   : > { %684 = vmatmul.mubr.f32.vlgmr.msra.gmra.mrb[0].mxu0 %v268_v26  ;;  %690 = vmatmul.mubr.f32.vlgmr.msra.gmra.mrb[0].mxu1 %v272_v27 }
  0x75   : > { %686 = vmatprep.mubr.f32.mxu0 %v269_v28  ;;  %692 = vmatprep.mubr.f32.mxu1 %v273_v29 }
  0x78   : > { %687 = vmatmul.mubr.f32.gmra.mrb[2].mxu0 %v270_v30  ;;  %693 = vmatmul.mubr.f32.gmra.mrb[2].mxu1 %v274_v31 }
 0x146   : > { %399 = sbr.rel (%p619_p9) target bundleno = 336 (0x150), region = 44 }
 0x147   : > { %v1175_v32 = vpop.f32.mrb[0].mxu0  ;;  %v1177_v33 = vpop.f32.mrb[0].mxu1 }
 0x148   : > { %v357_v34 = vpop.f32.mrb[1].mxu0  ;;  %v1179_v35 = vpop.f32.mrb[1].mxu1  ;;  %v408_v42 = vadd.f32 (!%p619_p9), %v1175_v32, %v620_v40  ;;  %v412_v46 = vadd.f32 (!%p619_p9), %v1177_v33, %v620_v40 }
 0x149   : > { %v407_v41 = vadd.f32 (!%p619_p9), %v620_v40, %v357_v34  ;;  %v411_v45 = vadd.f32 (!%p619_p9), %v620_v40, %v1179_v35 }
 0x14a   : > { %416 = vst [vmem:[#allocation2 + $0x8] sm:$0xff] (!%p619_p9), %v408_v42  ;;  %420 = vst [vmem:[#allocation2 + $0x28] sm:$0xff] (!%p619_p9), %v412_v46 }
 0x14b   : > { %v1181_v36 = vpop.f32.mrb[2].mxu0  ;;  %v1183_v37 = vpop.f32.mrb[2].mxu1  ;;  %415 = vst [vmem:[#allocation2] sm:$0xff] (!%p619_p9), %v407_v41  ;;  %419 = vst [vmem:[#allocation2 + $0x20] sm:$0xff] (!%p619_p9), %v411_v45 }
 0x14c   : > { %v367_v38 = vpop.f32.mrb[3].mxu0  ;;  %v1185_v39 = vpop.f32.mrb[3].mxu1  ;;  %v410_v44 = vadd.f32 (!%p619_p9), %v1181_v36, %v620_v40  ;;  %v414_v48 = vadd.f32 (!%p619_p9), %v1183_v37, %v620_v40 }
 0x14d   : > { %v409_v43 = vadd.f32 %v620_v40, %v367_v38  ;;  %v413_v47 = vadd.f32 %v620_v40, %v1185_v39 }
 0x14e   : > { %418 = vst [vmem:[#allocation2 + $0x18] sm:$0xff] %v410_v44  ;;  %422 = vst [vmem:[#allocation2 + $0x38] sm:$0xff] %v414_v48 }
 0x14f   : > { %417 = vst [vmem:[#allocation2 + $0x10] sm:$0xff] %v409_v43  ;;  %421 = vst [vmem:[#allocation2 + $0x30] sm:$0xff] %v413_v47 }
 0x150 PF: > { %p423_p12 = scmp.gt.s32.totalorder %s951_s15, 0  ;;  %p424_p4 = scmp.lt.s32.totalorder %s951_s15, 3 }
 0x152   : > { %p425_p8 = pnand %p424_p4, %p423_p12 }
 0x154   : > { %428 = sbr.rel (%p425_p8) target bundleno = 348 (0x15c), region = 48  ;;  %v430_v50 = vld [vmem:[#allocation2 + $0x8] sm:$0xff] (!%p425_p8) }
 0x155   : > { %v429_v49 = vld [vmem:[#allocation2] sm:$0xff] (!%p425_p8)  ;;  %v438_v53 = vadd.f32 (!%p425_p8), %v1175_v32, %v430_v50  ;;  %v432_v55 = vld [vmem:[#allocation2 + $0x18] sm:$0xff] (!%p425_p8)  ;;  %v434_v57 = vld [vmem:[#allocation2 + $0x28] sm:$0xff] (!%p425_p8) }
 0x156   : > { %v431_v51 = vld [vmem:[#allocation2 + $0x10] sm:$0xff] (!%p425_p8)  ;;  %v437_v52 = vadd.f32 (!%p425_p8), %v429_v49, %v357_v34  ;;  %v433_v56 = vld [vmem:[#allocation2 + $0x20] sm:$0xff] (!%p425_p8)  ;;  %v440_v58 = vadd.f32 (!%p425_p8), %v1181_v36, %v432_v55  ;;  %v442_v60 = vadd.f32 (!%p425_p8), %v1177_v33, %v434_v57  ;;  %v436_v62 = vld [vmem:[#allocation2 + $0x38] sm:$0xff] (!%p425_p8) }
 0x157   : > { %v439_v54 = vadd.f32 (!%p425_p8), %v431_v51, %v367_v38  ;;  %v441_v59 = vadd.f32 (!%p425_p8), %v433_v56, %v1179_v35  ;;  %v435_v61 = vld [vmem:[#allocation2 + $0x30] sm:$0xff] (!%p425_p8)  ;;  %446 = vst [vmem:[#allocation2 + $0x8] sm:$0xff] (!%p425_p8), %v438_v53  ;;  %v444_v0 = vadd.f32 (!%p425_p8), %v1183_v37, %v436_v62 }
 0x158   : > { %445 = vst [vmem:[#allocation2] sm:$0xff] (!%p425_p8), %v437_v52  ;;  %v443_v63 = vadd.f32 (!%p425_p8), %v435_v61, %v1185_v39  ;;  %448 = vst [vmem:[#allocation2 + $0x18] sm:$0xff] (!%p425_p8), %v440_v58 }
 0x159   : > { %447 = vst [vmem:[#allocation2 + $0x10] sm:$0xff] (!%p425_p8), %v439_v54  ;;  %449 = vst [vmem:[#allocation2 + $0x20] sm:$0xff] (!%p425_p8), %v441_v59 }
 0x15a   : > { %450 = vst [vmem:[#allocation2 + $0x28] sm:$0xff] (!%p425_p8), %v442_v60  ;;  %451 = vst [vmem:[#allocation2 + $0x30] sm:$0xff] (!%p425_p8), %v443_v63 }
 0x15b   : > { %452 = vst [vmem:[#allocation2 + $0x38] sm:$0xff] %v444_v0 }
 0x15c PF: > { %p621_p2 = scmp.ne.s32.totalorder %s951_s15, 3 }
 0x15e   : > { %456 = sbr.rel (%p621_p2) target bundleno = 361 (0x169), region = 52 }
 0x15f   : > { %v458_v2 = vld [vmem:[#allocation2 + $0x8] sm:$0xff] (!%p621_p2) }
 0x160   : > { %v457_v1 = vld [vmem:[#allocation2] sm:$0xff] (!%p621_p2)  ;;  %v466_v5 = vadd.f32 (!%p621_p2), %v1175_v32, %v458_v2  ;;  %v460_v7 = vld [vmem:[#allocation2 + $0x18] sm:$0xff] (!%p621_p2) }
 0x161   : > { %v459_v3 = vld [vmem:[#allocation2 + $0x10] sm:$0xff] (!%p621_p2)  ;;  %v465_v4 = vadd.f32 (!%p621_p2), %v457_v1, %v357_v34  ;;  %v461_v8 = vld [vmem:[#allocation2 + $0x20] sm:$0xff] (!%p621_p2)  ;;  %v468_v10 = vadd.f32 (!%p621_p2), %v1181_v36, %v460_v7 }
 0x162   : > { %v467_v6 = vadd.f32 (!%p621_p2), %v459_v3, %v367_v38  ;;  %v462_v9 = vld [vmem:[#allocation2 + $0x28] sm:$0xff] (!%p621_p2)  ;;  %v469_v11 = vadd.f32 (!%p621_p2), %v461_v8, %v1179_v35  ;;  %v463_v13 = vld [vmem:[#allocation2 + $0x30] sm:$0xff] (!%p621_p2)  ;;  %v464_v14 = vld [vmem:[#allocation2 + $0x38] sm:$0xff] (!%p621_p2)  ;;  %v474_v16 = vmax.f32 (!%p621_p2), %v466_v5, 0.0 }
 0x163   : > { %v470_v12 = vadd.f32 (!%p621_p2), %v1177_v33, %v462_v9  ;;  %v473_v15 = vmax.f32 (!%p621_p2), %v465_v4, 0.0  ;;  %v471_v18 = vadd.f32 (!%p621_p2), %v463_v13, %v1185_v39  ;;  %v476_v19 = vmax.f32 (!%p621_p2), %v468_v10, 0.0 }
 0x164   : > { %v475_v17 = vmax.f32 (!%p621_p2), %v467_v6, 0.0  ;;  %v477_v20 = vmax.f32 (!%p621_p2), %v469_v11, 0.0  ;;  %v472_v22 = vadd.f32 (!%p621_p2), %v1183_v37, %v464_v14  ;;  %482 = vst [vmem:[#allocation8 + $0x8] sm:$0xff] (!%p621_p2), %v474_v16 }
 0x165   : > { %v478_v21 = vmax.f32 %v470_v12, 0.0  ;;  %481 = vst [vmem:[#allocation8] sm:$0xff] %v473_v15  ;;  %v479_v23 = vmax.f32 %v471_v18, 0.0  ;;  %484 = vst [vmem:[#allocation8 + $0x18] sm:$0xff] %v476_v19 }
 0x166   : > { %483 = vst [vmem:[#allocation8 + $0x10] sm:$0xff] %v475_v17  ;;  %485 = vst [vmem:[#allocation8 + $0x20] sm:$0xff] %v477_v20  ;;  %v480_v24 = vmax.f32 %v472_v22, 0.0 }
 0x167   : > { %486 = vst [vmem:[#allocation8 + $0x28] sm:$0xff] %v478_v21  ;;  %487 = vst [vmem:[#allocation8 + $0x30] sm:$0xff] %v479_v23 }
 0x168   : > { %488 = vst [vmem:[#allocation8 + $0x38] sm:$0xff] %v480_v24 }
 0x169 PF: > { %p1214_p3 = scmp.eq.s32.totalorder %s607_s18, 3  ;;  %s966_s4 = smov [#allocation8]  }
 0x16a   : > { %s499_s10 = sshll.u32 %s966_s4, 4  ;;  %s500_s10 = int_to_ptr.vmem [resolvable:$true] %s499_s10 }
 0x16b   : > { %s875_s20 = scalar_lea.vmem %s500_s10, 1024  ;;  %p882_p6 = scmp.lt.s32.totalorder %s500_s10, %s500_s10 }
 0x16c   : > { %p876_p10 = scmp.ne.s32.totalorder %s500_s10, %s875_s20  ;;  %p883_p11 = scmp.lt.s32.totalorder %s875_s20, %s875_s20 }
 0x16e   : > { %p877_p0 = pnand %p876_p10, %p1214_p3  ;;  %p884_p13 = por %p883_p11, %p882_p6 }
 0x170   : > { %p878_p5 = pneg %p877_p0 }
 0x172   : > { %p885_p1 = pnand %p884_p13, %p878_p5 }
 0x174   : > { %888 = shalt.err (!%p885_p1)
}
 0x175   : > { %s889_s18 = scalar_lea.hbm %s1261_s3, 1024 }
 0x176   : > { %p890_p7 = scmp.ne.s32.totalorder %s1261_s3, %s889_s18  ;;  %p895_p4 = scmp.lt.u32.totalorder %s889_s18, %s1261_s3 }
 0x178   : > { %p891_p9 = pnand %p890_p7, %p1214_p3 }
 0x17a   : > { %p892_p12 = pneg %p891_p9 }
 0x17c   : > { %p897_p8 = pnand %p895_p4, %p892_p12 }
 0x17e   : > { %900 = shalt.err (!%p897_p8)
}
 0x17f   : > { %s967_s21 = smov 128   ;;  %s968_s5 = smov 8  }
 0x180   : > { %748 = dma.vmem_to_hbm [thread:$0]  (%p1214_p3), %s500_s10, 1024, %s1261_s3, [#allocation5], %s967_s21, %s967_s21, %s968_s5  }
 0x181   : > { %934 = dma.done.wait (%p1214_p3), [#allocation5], 1024  }
 0x182   : > { %936 = vsyncadd (%p1214_p3), [#allocation5], 4294966272 }
 0x183 PF: > { %s20_s17 = sadd.s32 1, %s959_s17   ;;  %s1270_s12 = smov %s943_s13 }
 0x184   : > { %p17_p2 = scmp.ge.s32.totalorder %s20_s17, 6   ;;  %s1271_s13 = smov %s947_s14 }
 0x185   : > { %s1272_s14 = smov %s1040_s24  ;;  %s1273_s15 = smov %s955_s16 }
 0x186   : > { %s1274_s16 = smov %s1276_s19  ;;  %19 = sbr.rel (!%p17_p2) target bundleno = 7 (0x7), region = 98 }
 0x18d   :  { %515 = vsyncpa [#allocation4], 1 }
 0x18e   :  { %517 = vsyncpa [#allocation4 + $0x1], 1 }
 0x18f   :  { %518 = vsyncpa [#allocation7], 1 }
 0x190   :  { %520 = vsyncpa [#allocation7 + $0x1], 1 }
 0x191   :  { %521 = vsyncpa [#allocation5], 1 }
 0x192   :  { %523 = vsyncpa [#allocation5 + $0x1], 1 }

</bundles_post_ra>
